<compile_context>
chip_gen: v6e
topology: v6e:2x2x1
jax: 0.10.0
libtpu: 0.0.40
codegen_flags: <defaults>
</compile_context>

<pallas_src>
import jax
import jax.numpy as jnp
from jax.experimental import pallas as pl
from jax.experimental.pallas import tpu as pltpu

HIDDEN = 200        # logical hidden size (PyTorch model)
HIDDEN_PAD = 256    # padded to the 256-wide MXU / lane tile


def _round_up(x, m):
    return ((x + m - 1) // m) * m


def _mlp_kernel(x_ref, w1_ref, b1_ref, w2_ref, b2_ref, w3_ref, b3_ref, o_ref):
    mxu_dtype = w1_ref.dtype          # bf16 (default) or f32

    # fc1 + ReLU  (MXU matmul, f32 accumulation; bias/ReLU epilogue in f32)
    h1 = jnp.dot(x_ref[...].astype(mxu_dtype), w1_ref[...],
                 preferred_element_type=jnp.float32)
    h1 = jnp.maximum(h1 + b1_ref[...], 0.0)

    # fc2 + ReLU
    h2 = jnp.dot(h1.astype(mxu_dtype), w2_ref[...],
                 preferred_element_type=jnp.float32)
    h2 = jnp.maximum(h2 + b2_ref[...], 0.0)

    # fc3 + sigmoid: 1-wide output -> VPU multiply + XLU lane reduction (no
    # MXU pass wasted on a single column); scalar bias read from SMEM.  The
    # (tb,) result lives along lanes, so the store below is a lane-dense
    # (1, tb) row rather than a masked (tb, 1) vst.msk.
    logits = jnp.sum(h2 * w3_ref[...], axis=-1) + b3_ref[0]        # (tb,)
    o_ref[...] = jax.nn.sigmoid(logits).astype(o_ref.dtype)[None, :]


def _pick_tile(batch, tile_b):
    """Batch-tile size: full (8-aligned) batch for tiny inputs, otherwise
    ~ceil(B/2) rounded to a 128 multiple (>=2 grid steps for v7x megacore and
    a 128-aligned lane-dense output block), capped at tile_b."""
    b8 = _round_up(max(batch, 1), 8)
    if b8 <= 128:
        return b8                                   # single full-array tile
    return min(_round_up(tile_b, 128), _round_up(pl.cdiv(b8, 2), 128))


def _forward_call(x_pad, w1p, b1p, w2p, b2p, w3p, b3s, *, tb, num_tiles,
                  flops, transcendentals, single_buffer_weights):
    b_total, d = x_pad.shape

    def const_spec(arr):
        # Grid-invariant block: stays VMEM-resident across all grid steps.
        if single_buffer_weights:
            return pl.BlockSpec(arr.shape, lambda i: (0, 0),
                                pipeline_mode=pl.Buffered(1))
        return pl.BlockSpec(arr.shape, lambda i: (0, 0))

    bytes_accessed = (x_pad.size * x_pad.dtype.itemsize + 4 * b_total
                      + w1p.size * w1p.dtype.itemsize
                      + w2p.size * w2p.dtype.itemsize
                      + 4 * (b1p.size + b2p.size + w3p.size + 1))
    cost = pl.CostEstimate(flops=flops, transcendentals=transcendentals,
                           bytes_accessed=bytes_accessed)

    return pl.pallas_call(
        _mlp_kernel,
        out_shape=jax.ShapeDtypeStruct((1, b_total), jnp.float32),
        grid=(num_tiles,),
        in_specs=[
            pl.BlockSpec((tb, d), lambda i: (i, 0)),            # x streamed per tile
            const_spec(w1p), const_spec(b1p),
            const_spec(w2p), const_spec(b2p),
            const_spec(w3p),
            pl.BlockSpec(memory_space=pltpu.MemorySpace.SMEM),  # scalar bias b3
        ],
        out_specs=pl.BlockSpec((1, tb), lambda i: (0, i)),      # lane-dense slab
        compiler_params=pltpu.CompilerParams(
            dimension_semantics=("parallel",),                  # v7x: split tiles over TCs
            vmem_limit_bytes=48 * 1024 * 1024),
        cost_estimate=cost,
    )(x_pad, w1p, b1p, w2p, b2p, w3p, b3s)


def net_forward(x, params, *, tile_b=2048, mxu_bf16=True):
    """Full MLP forward pass as a single batch-tiled Pallas kernel.

    x:       (B, input_size) float32
    params:  dict with w1 (D,200), b1 (1,200), w2 (200,200), b2 (1,200),
             w3 (200,1), b3 (1,1)  (y = x @ W + b layout)
    returns: (B, 1) float32 in (0, 1)
    """
    B, D = x.shape
    w1, b1 = params["w1"], params["b1"]
    w2, b2 = params["w2"], params["b2"]
    w3, b3 = params["w3"], params["b3"]

    mxu_dtype = jnp.bfloat16 if mxu_bf16 else jnp.float32

    # Zero-pad hidden 200 -> 256 (exact: padded lanes stay 0 through ReLU and
    # contribute 0 to the fc3 reduction).  Matmul operands in MXU dtype.
    pad_h = HIDDEN_PAD - HIDDEN
    w1p = jnp.pad(w1, ((0, 0), (0, pad_h))).astype(mxu_dtype)
    b1p = jnp.pad(b1, ((0, 0), (0, pad_h))).astype(jnp.float32)
    w2p = jnp.pad(w2, ((0, pad_h), (0, pad_h))).astype(mxu_dtype)
    b2p = jnp.pad(b2, ((0, 0), (0, pad_h))).astype(jnp.float32)
    w3p = jnp.pad(w3.reshape(1, HIDDEN), ((0, 0), (0, pad_h))).astype(jnp.float32)
    b3s = b3.reshape((1,)).astype(jnp.float32)

    tb = _pick_tile(B, tile_b)
    num_tiles = pl.cdiv(B, tb)
    b_total = num_tiles * tb
    # Pad the batch so the last tile holds defined (zero) rows; extra output
    # rows are sliced off below.
    x_pad = x if b_total == B else jnp.pad(x, ((0, b_total - B), (0, 0)))

    flops = 2 * B * (D * HIDDEN + HIDDEN * HIDDEN + HIDDEN)

    try:
        out_row = _forward_call(x_pad, w1p, b1p, w2p, b2p, w3p, b3s,
                                tb=tb, num_tiles=num_tiles, flops=flops,
                                transcendentals=B, single_buffer_weights=True)
    except Exception:
        # Fallback for JAX versions that reject pl.Buffered(1).
        out_row = _forward_call(x_pad, w1p, b1p, w2p, b2p, w3p, b3s,
                                tb=tb, num_tiles=num_tiles, flops=flops,
                                transcendentals=B, single_buffer_weights=False)

    return out_row[0, :B].reshape(B, 1)


def init_params(key, input_size, hidden=HIDDEN):
    """Deterministic init mimicking PyTorch's nn.Linear default
    (uniform(-1/sqrt(fan_in), 1/sqrt(fan_in)))."""
    ks = jax.random.split(key, 6)

    def lin(kw, kb, fan_in, fan_out):
        bound = 1.0 / jnp.sqrt(fan_in)
        w = jax.random.uniform(kw, (fan_in, fan_out), jnp.float32, -bound, bound)
        b = jax.random.uniform(kb, (1, fan_out), jnp.float32, -bound, bound)
        return w, b

    w1, b1 = lin(ks[0], ks[1], input_size, hidden)
    w2, b2 = lin(ks[2], ks[3], hidden, hidden)
    w3, b3 = lin(ks[4], ks[5], hidden, 1)
    return {"w1": w1, "b1": b1, "w2": w2, "b2": b2, "w3": w3, "b3": b3}


def _reference(x, p):
    h1 = jnp.maximum(x @ p["w1"] + p["b1"], 0.0)
    h2 = jnp.maximum(h1 @ p["w2"] + p["b2"], 0.0)
    return jax.nn.sigmoid(h2 @ p["w3"] + p["b3"])


if __name__ == "__main__":
    key = jax.random.PRNGKey(0)
    k_x, k_p, k_x2 = jax.random.split(key, 3)

    batch = 8
    input_size = 32  # e.g. number of encoded features of the Adult dataset

    x = jax.random.normal(k_x, (batch, input_size), jnp.float32)
    params = init_params(k_p, input_size)
    ref = _reference(x, params)

    # Default fast path (bf16 MXU operands, f32 accumulation).
    out = jax.block_until_ready(net_forward(x, params))
    assert out.shape == (batch, 1)
    assert jnp.allclose(out, ref, atol=2e-2, rtol=2e-2), "bf16 path mismatch"

    # Exact-numerics path (f32 MXU operands).
    out_f32 = jax.block_until_ready(net_forward(x, params, mxu_bf16=False))
    assert jnp.allclose(out_f32, ref, atol=2e-5, rtol=2e-5), "f32 path mismatch"

    # Multi-tile path: exercises the parallel grid, batch padding and the
    # lane-dense (1, B_pad) output slab.
    batch2 = 160
    x2 = jax.random.normal(k_x2, (batch2, input_size), jnp.float32)
    out2 = jax.block_until_ready(net_forward(x2, params))
    ref2 = _reference(x2, params)
    assert out2.shape == (batch2, 1)
    assert jnp.allclose(out2, ref2, atol=2e-2, rtol=2e-2), "multi-tile mismatch"

    print("KERNEL_OK")
</pallas_src>

<mosaic_0001>
module attributes {stable_mosaic.version = 11 : i64} {
  func.func @_mlp_kernel(%arg0: i32, %arg1: memref<8x32xf32, #tpu.memory_space<vmem>>, %arg2: memref<32x256xbf16, #tpu.memory_space<vmem>>, %arg3: memref<1x256xf32, #tpu.memory_space<vmem>>, %arg4: memref<256x256xbf16, #tpu.memory_space<vmem>>, %arg5: memref<1x256xf32, #tpu.memory_space<vmem>>, %arg6: memref<1x256xf32, #tpu.memory_space<vmem>>, %arg7: memref<1xf32, #tpu.memory_space<smem>>, %arg8: memref<1x8xf32, #tpu.memory_space<vmem>>) attributes {dimension_semantics = [#tpu.dimension_semantics<parallel>], iteration_bounds = array<i64: 1>, scalar_prefetch = 0 : i64, scratch_operands = 0 : i64, tpu.core_type = #tpu.core_type<tc>, window_params = [{transform_indices = @transform_0, window_bounds = array<i64: 8, 32>}, {pipeline_mode = #tpu.pipeline_mode<synchronous>, transform_indices = @transform_1, window_bounds = array<i64: 32, 256>}, {pipeline_mode = #tpu.pipeline_mode<synchronous>, transform_indices = @transform_2, window_bounds = array<i64: 1, 256>}, {pipeline_mode = #tpu.pipeline_mode<synchronous>, transform_indices = @transform_3, window_bounds = array<i64: 256, 256>}, {pipeline_mode = #tpu.pipeline_mode<synchronous>, transform_indices = @transform_4, window_bounds = array<i64: 1, 256>}, {pipeline_mode = #tpu.pipeline_mode<synchronous>, transform_indices = @transform_5, window_bounds = array<i64: 1, 256>}, {transform_indices = @transform_6, window_bounds = array<i64: 1>}, {transform_indices = @transform_7, window_bounds = array<i64: 1, 8>}]} {
    %c0 = arith.constant 0 : index
    %c0_0 = arith.constant 0 : index
    %0 = vector.load %arg1[%c0, %c0_0] : memref<8x32xf32, #tpu.memory_space<vmem>>, vector<8x32xf32>
    %1 = arith.truncf %0 : vector<8x32xf32> to vector<8x32xbf16>
    %c0_1 = arith.constant 0 : index
    %c0_2 = arith.constant 0 : index
    %2 = vector.load %arg2[%c0_1, %c0_2] : memref<32x256xbf16, #tpu.memory_space<vmem>>, vector<32x256xbf16>
    %cst = arith.constant dense<0.000000e+00> : vector<8x256xf32>
    %3 = tpu.matmul %1, %2, %cst {dimension_numbers = #tpu.dot_dimension_numbers<[1], [0], [0], [1], [0, 0, 1, 1], [], []>} : vector<8x32xbf16>, vector<32x256xbf16>, vector<8x256xf32> -> vector<8x256xf32>
    %c0_3 = arith.constant 0 : index
    %c0_4 = arith.constant 0 : index
    %4 = vector.load %arg3[%c0_3, %c0_4] : memref<1x256xf32, #tpu.memory_space<vmem>>, vector<1x256xf32>
    %5 = vector.broadcast %4 : vector<1x256xf32> to vector<8x256xf32>
    %6 = arith.addf %3, %5 : vector<8x256xf32>
    %cst_5 = arith.constant 0.000000e+00 : f32
    %7 = vector.broadcast %cst_5 : f32 to vector<8x256xf32>
    %8 = arith.maximumf %6, %7 : vector<8x256xf32>
    %9 = arith.truncf %8 : vector<8x256xf32> to vector<8x256xbf16>
    %c0_6 = arith.constant 0 : index
    %c0_7 = arith.constant 0 : index
    %10 = vector.load %arg4[%c0_6, %c0_7] : memref<256x256xbf16, #tpu.memory_space<vmem>>, vector<256x256xbf16>
    %cst_8 = arith.constant dense<0.000000e+00> : vector<8x256xf32>
    %11 = tpu.matmul %9, %10, %cst_8 {dimension_numbers = #tpu.dot_dimension_numbers<[1], [0], [0], [1], [0, 0, 1, 1], [], []>} : vector<8x256xbf16>, vector<256x256xbf16>, vector<8x256xf32> -> vector<8x256xf32>
    %c0_9 = arith.constant 0 : index
    %c0_10 = arith.constant 0 : index
    %12 = vector.load %arg5[%c0_9, %c0_10] : memref<1x256xf32, #tpu.memory_space<vmem>>, vector<1x256xf32>
    %13 = vector.broadcast %12 : vector<1x256xf32> to vector<8x256xf32>
    %14 = arith.addf %11, %13 : vector<8x256xf32>
    %cst_11 = arith.constant 0.000000e+00 : f32
    %15 = vector.broadcast %cst_11 : f32 to vector<8x256xf32>
    %16 = arith.maximumf %14, %15 : vector<8x256xf32>
    %c0_12 = arith.constant 0 : index
    %c0_13 = arith.constant 0 : index
    %17 = vector.load %arg6[%c0_12, %c0_13] : memref<1x256xf32, #tpu.memory_space<vmem>>, vector<1x256xf32>
    %18 = vector.broadcast %17 : vector<1x256xf32> to vector<8x256xf32>
    %19 = arith.mulf %16, %18 : vector<8x256xf32>
    %cst_14 = arith.constant dense<0.000000e+00> : vector<8xf32>
    %20 = vector.multi_reduction <add>, %19, %cst_14 [1] : vector<8x256xf32> to vector<8xf32>
    %c0_15 = arith.constant 0 : index
    %21 = memref.load %arg7[%c0_15] : memref<1xf32, #tpu.memory_space<smem>>
    %22 = vector.broadcast %21 : f32 to vector<8xf32>
    %23 = arith.addf %20, %22 : vector<8xf32>
    %24 = arith.negf %23 : vector<8xf32>
    %25 = math.exp %24 : vector<8xf32>
    %cst_16 = arith.constant 1.000000e+00 : f32
    %26 = vector.broadcast %cst_16 : f32 to vector<8xf32>
    %27 = arith.addf %26, %25 : vector<8xf32>
    %28 = arith.divf %26, %27 : vector<8xf32>
    %29 = vector.shape_cast %28 : vector<8xf32> to vector<1x8xf32>
    %c0_17 = arith.constant 0 : index
    %c0_18 = arith.constant 0 : index
    %30 = vector.load %arg8[%c0_17, %c0_18] : memref<1x8xf32, #tpu.memory_space<vmem>>, vector<1x8xf32>
    tpu.vector_store %arg8[%c0_17, %c0_18], %29 {strides = array<i32>} : memref<1x8xf32, #tpu.memory_space<vmem>>, vector<1x8xf32>,
    return
  }
  func.func @transform_0(%arg0: i32) -> (i32, i32) {
    %c0_i32 = arith.constant 0 : i32
    %c0_i32_0 = arith.constant 0 : i32
    return %arg0, %c0_i32 : i32, i32
  }
  func.func @transform_1(%arg0: i32) -> (i32, i32) {
    %c0_i32 = arith.constant 0 : i32
    %c0_i32_0 = arith.constant 0 : i32
    %c0_i32_1 = arith.constant 0 : i32
    return %c0_i32, %c0_i32_0 : i32, i32
  }
  func.func @transform_2(%arg0: i32) -> (i32, i32) {
    %c0_i32 = arith.constant 0 : i32
    %c0_i32_0 = arith.constant 0 : i32
    %c0_i32_1 = arith.constant 0 : i32
    return %c0_i32, %c0_i32_0 : i32, i32
  }
  func.func @transform_3(%arg0: i32) -> (i32, i32) {
    %c0_i32 = arith.constant 0 : i32
    %c0_i32_0 = arith.constant 0 : i32
    %c0_i32_1 = arith.constant 0 : i32
    return %c0_i32, %c0_i32_0 : i32, i32
  }
  func.func @transform_4(%arg0: i32) -> (i32, i32) {
    %c0_i32 = arith.constant 0 : i32
    %c0_i32_0 = arith.constant 0 : i32
    %c0_i32_1 = arith.constant 0 : i32
    return %c0_i32, %c0_i32_0 : i32, i32
  }
  func.func @transform_5(%arg0: i32) -> (i32, i32) {
    %c0_i32 = arith.constant 0 : i32
    %c0_i32_0 = arith.constant 0 : i32
    %c0_i32_1 = arith.constant 0 : i32
    return %c0_i32, %c0_i32_0 : i32, i32
  }
  func.func @transform_6(%arg0: i32) -> i32 {
    %c0_i32 = arith.constant 0 : i32
    %c0_i32_0 = arith.constant 0 : i32
    return %c0_i32 : i32
  }
  func.func @transform_7(%arg0: i32) -> (i32, i32) {
    %c0_i32 = arith.constant 0 : i32
    %c0_i32_0 = arith.constant 0 : i32
    return %c0_i32, %arg0 : i32, i32
  }
}

module attributes {stable_mosaic.version = 11 : i64} {
  func.func @_mlp_kernel(%arg0: i32, %arg1: memref<8x32xf32, #tpu.memory_space<vmem>>, %arg2: memref<32x256xbf16, #tpu.memory_space<vmem>>, %arg3: memref<1x256xf32, #tpu.memory_space<vmem>>, %arg4: memref<256x256xbf16, #tpu.memory_space<vmem>>, %arg5: memref<1x256xf32, #tpu.memory_space<vmem>>, %arg6: memref<1x256xf32, #tpu.memory_space<vmem>>, %arg7: memref<1xf32, #tpu.memory_space<smem>>, %arg8: memref<1x8xf32, #tpu.memory_space<vmem>>) attributes {dimension_semantics = [#tpu.dimension_semantics<parallel>], iteration_bounds = array<i64: 1>, scalar_prefetch = 0 : i64, scratch_operands = 0 : i64, tpu.core_type = #tpu.core_type<tc>, window_params = [{transform_indices = @transform_0, window_bounds = array<i64: 8, 32>}, {pipeline_mode = #tpu.pipeline_mode<synchronous>, transform_indices = @transform_1, window_bounds = array<i64: 32, 256>}, {pipeline_mode = #tpu.pipeline_mode<synchronous>, transform_indices = @transform_2, window_bounds = array<i64: 1, 256>}, {pipeline_mode = #tpu.pipeline_mode<synchronous>, transform_indices = @transform_3, window_bounds = array<i64: 256, 256>}, {pipeline_mode = #tpu.pipeline_mode<synchronous>, transform_indices = @transform_4, window_bounds = array<i64: 1, 256>}, {pipeline_mode = #tpu.pipeline_mode<synchronous>, transform_indices = @transform_5, window_bounds = array<i64: 1, 256>}, {transform_indices = @transform_6, window_bounds = array<i64: 1>}, {transform_indices = @transform_7, window_bounds = array<i64: 1, 8>}]} {
    %c0 = arith.constant 0 : index
    %c0_0 = arith.constant 0 : index
    %0 = vector.load %arg1[%c0, %c0_0] : memref<8x32xf32, #tpu.memory_space<vmem>>, vector<8x32xf32>
    %1 = arith.truncf %0 : vector<8x32xf32> to vector<8x32xbf16>
    %c0_1 = arith.constant 0 : index
    %c0_2 = arith.constant 0 : index
    %2 = vector.load %arg2[%c0_1, %c0_2] : memref<32x256xbf16, #tpu.memory_space<vmem>>, vector<32x256xbf16>
    %cst = arith.constant dense<0.000000e+00> : vector<8x256xf32>
    %3 = tpu.matmul %1, %2, %cst {dimension_numbers = #tpu.dot_dimension_numbers<[1], [0], [0], [1], [0, 0, 1, 1], [], []>} : vector<8x32xbf16>, vector<32x256xbf16>, vector<8x256xf32> -> vector<8x256xf32>
    %c0_3 = arith.constant 0 : index
    %c0_4 = arith.constant 0 : index
    %4 = vector.load %arg3[%c0_3, %c0_4] : memref<1x256xf32, #tpu.memory_space<vmem>>, vector<1x256xf32>
    %5 = vector.broadcast %4 : vector<1x256xf32> to vector<8x256xf32>
    %6 = arith.addf %3, %5 : vector<8x256xf32>
    %cst_5 = arith.constant 0.000000e+00 : f32
    %7 = vector.broadcast %cst_5 : f32 to vector<8x256xf32>
    %8 = arith.maximumf %6, %7 : vector<8x256xf32>
    %9 = arith.truncf %8 : vector<8x256xf32> to vector<8x256xbf16>
    %c0_6 = arith.constant 0 : index
    %c0_7 = arith.constant 0 : index
    %10 = vector.load %arg4[%c0_6, %c0_7] : memref<256x256xbf16, #tpu.memory_space<vmem>>, vector<256x256xbf16>
    %cst_8 = arith.constant dense<0.000000e+00> : vector<8x256xf32>
    %11 = tpu.matmul %9, %10, %cst_8 {dimension_numbers = #tpu.dot_dimension_numbers<[1], [0], [0], [1], [0, 0, 1, 1], [], []>} : vector<8x256xbf16>, vector<256x256xbf16>, vector<8x256xf32> -> vector<8x256xf32>
    %c0_9 = arith.constant 0 : index
    %c0_10 = arith.constant 0 : index
    %12 = vector.load %arg5[%c0_9, %c0_10] : memref<1x256xf32, #tpu.memory_space<vmem>>, vector<1x256xf32>
    %13 = vector.broadcast %12 : vector<1x256xf32> to vector<8x256xf32>
    %14 = arith.addf %11, %13 : vector<8x256xf32>
    %cst_11 = arith.constant 0.000000e+00 : f32
    %15 = vector.broadcast %cst_11 : f32 to vector<8x256xf32>
    %16 = arith.maximumf %14, %15 : vector<8x256xf32>
    %c0_12 = arith.constant 0 : index
    %c0_13 = arith.constant 0 : index
    %17 = vector.load %arg6[%c0_12, %c0_13] : memref<1x256xf32, #tpu.memory_space<vmem>>, vector<1x256xf32>
    %18 = vector.broadcast %17 : vector<1x256xf32> to vector<8x256xf32>
    %19 = arith.mulf %16, %18 : vector<8x256xf32>
    %cst_14 = arith.constant dense<0.000000e+00> : vector<8xf32>
    %20 = vector.multi_reduction <add>, %19, %cst_14 [1] : vector<8x256xf32> to vector<8xf32>
    %c0_15 = arith.constant 0 : index
    %21 = memref.load %arg7[%c0_15] : memref<1xf32, #tpu.memory_space<smem>>
    %22 = vector.broadcast %21 : f32 to vector<8xf32>
    %23 = arith.addf %20, %22 : vector<8xf32>
    %24 = arith.negf %23 : vector<8xf32>
    %25 = math.exp %24 : vector<8xf32>
    %cst_16 = arith.constant 1.000000e+00 : f32
    %26 = vector.broadcast %cst_16 : f32 to vector<8xf32>
    %27 = arith.addf %26, %25 : vector<8xf32>
    %28 = arith.divf %26, %27 : vector<8xf32>
    %29 = vector.shape_cast %28 : vector<8xf32> to vector<1x8xf32>
    %c0_17 = arith.constant 0 : index
    %c0_18 = arith.constant 0 : index
    %30 = vector.load %arg8[%c0_17, %c0_18] : memref<1x8xf32, #tpu.memory_space<vmem>>, vector<1x8xf32>
    tpu.vector_store %arg8[%c0_17, %c0_18], %29 {strides = array<i32>} : memref<1x8xf32, #tpu.memory_space<vmem>>, vector<1x8xf32>,
    return
  }
  func.func @transform_0(%arg0: i32) -> (i32, i32) {
    %c0_i32 = arith.constant 0 : i32
    %c0_i32_0 = arith.constant 0 : i32
    return %arg0, %c0_i32 : i32, i32
  }
  func.func @transform_1(%arg0: i32) -> (i32, i32) {
    %c0_i32 = arith.constant 0 : i32
    %c0_i32_0 = arith.constant 0 : i32
    %c0_i32_1 = arith.constant 0 : i32
    return %c0_i32, %c0_i32_0 : i32, i32
  }
  func.func @transform_2(%arg0: i32) -> (i32, i32) {
    %c0_i32 = arith.constant 0 : i32
    %c0_i32_0 = arith.constant 0 : i32
    %c0_i32_1 = arith.constant 0 : i32
    return %c0_i32, %c0_i32_0 : i32, i32
  }
  func.func @transform_3(%arg0: i32) -> (i32, i32) {
    %c0_i32 = arith.constant 0 : i32
    %c0_i32_0 = arith.constant 0 : i32
    %c0_i32_1 = arith.constant 0 : i32
    return %c0_i32, %c0_i32_0 : i32, i32
  }
  func.func @transform_4(%arg0: i32) -> (i32, i32) {
    %c0_i32 = arith.constant 0 : i32
    %c0_i32_0 = arith.constant 0 : i32
    %c0_i32_1 = arith.constant 0 : i32
    return %c0_i32, %c0_i32_0 : i32, i32
  }
  func.func @transform_5(%arg0: i32) -> (i32, i32) {
    %c0_i32 = arith.constant 0 : i32
    %c0_i32_0 = arith.constant 0 : i32
    %c0_i32_1 = arith.constant 0 : i32
    return %c0_i32, %c0_i32_0 : i32, i32
  }
  func.func @transform_6(%arg0: i32) -> i32 {
    %c0_i32 = arith.constant 0 : i32
    %c0_i32_0 = arith.constant 0 : i32
    return %c0_i32 : i32
  }
  func.func @transform_7(%arg0: i32) -> (i32, i32) {
    %c0_i32 = arith.constant 0 : i32
    %c0_i32_0 = arith.constant 0 : i32
    return %c0_i32, %arg0 : i32, i32
  }
}

</mosaic_0001>

<bundles_post_ra>
// kernel: tpu_custom_call.1
= control target key start
LH: loop header
LB: loop body
LE: loop exit
PB: predicated region body
PF: predicated region fallthrough
CT: control target
= control target key end

     0   :  { %13 = vsyncpa [#allocation4], 0  ;;  %s714_s0 = inlined_call_operand.hbm [shape: f32[8,32], index: 0, kind: input, shape index: {}]   ;;  %s715_s1 = inlined_call_operand.hbm [shape: bf16[32,256], index: 1, kind: input, shape index: {}]   ;;  %s716_s2 = inlined_call_operand.vmem [shape: f32[1,256], index: 2, kind: input, shape index: {}]   ;;  %s717_s3 = inlined_call_operand.hbm [shape: bf16[256,256], index: 3, kind: input, shape index: {}]   ;;  %s718_s4 = inlined_call_operand.vmem [shape: f32[1,256], index: 4, kind: input, shape index: {}]   ;;  %s719_s5 = inlined_call_operand.vmem [shape: f32[1,256], index: 5, kind: input, shape index: {}]   ;;  %s720_s6 = inlined_call_operand.<no memory space> [shape: f32[1], index: 6, kind: input, shape index: {}]   ;;  %s721_s7 = inlined_call_operand.hbm [shape: f32[1,8], index: 7, kind: output, shape index: {}]  }
   0x1   :  { %14 = vsyncpa [#allocation7], 0 }
   0x2   :  { %15 = vsyncpa [#allocation5], 0  ;;  %s643_s24 = smov [#allocation6]  }
   0x3   :  { %s31_s25 = sshll.u32 %s643_s24, 4  ;;  %s32_s25 = int_to_ptr.vmem [resolvable:$true] %s31_s25 }
   0x4   :  { %s565_s26 = scalar_lea.vmem %s32_s25, 512  ;;  %p570_p1 = scmp.lt.s32.totalorder %s32_s25, %s32_s25 }
   0x5   :  { %p566_p0 = scmp.ne.s32.totalorder %s32_s25, %s565_s26  ;;  %p571_p2 = scmp.lt.s32.totalorder %s565_s26, %s565_s26 }
   0x7   :  { %p572_p3 = por %p571_p2, %p570_p1 }
   0x9   :  { %p573_p4 = pnand %p572_p3, %p566_p0 }
   0xb   :  { %576 = shalt.err (!%p573_p4)
}
   0xc   :  { %s644_s27 = smov 128   ;;  %s645_s28 = smov 8  }
   0xd   :  { %37 = dma.hbm_to_vmem [thread:$0]  %s715_s1, 512, %s32_s25, [#allocation7], %s644_s27, %s644_s27, %s645_s28  }
   0xe   :  { %s646_s8 = smov [#allocation3]   ;;  %s647_s10 = smov [#allocation8]  }
   0xf   :  { %s22_s9 = sshll.u32 %s646_s8, 4  ;;  %s45_s11 = sshll.u32 %s647_s10, 4  ;;  %s23_s9 = int_to_ptr.vmem [resolvable:$true] %s22_s9  ;;  %s46_s11 = int_to_ptr.vmem [resolvable:$true] %s45_s11 }
  0x10   :  { %s585_s12 = scalar_lea.vmem %s23_s9, 128  ;;  %p590_p6 = scmp.lt.s32.totalorder %s23_s9, %s23_s9 }
  0x11   :  { %p586_p5 = scmp.ne.s32.totalorder %s23_s9, %s585_s12  ;;  %p591_p7 = scmp.lt.s32.totalorder %s585_s12, %s585_s12 }
  0x13   :  { %p592_p8 = por %p591_p7, %p590_p6 }
  0x15   :  { %p593_p9 = pnand %p592_p8, %p586_p5 }
  0x17   :  { %596 = shalt.err (!%p593_p9)
}
  0x18   :  { %25 = dma.hbm_to_vmem [thread:$0]  %s714_s0, 128, %s23_s9, [#allocation4]  }
  0x19   :  { %s605_s15 = scalar_lea.vmem %s46_s11, 4096  ;;  %p610_p11 = scmp.lt.s32.totalorder %s46_s11, %s46_s11 }
  0x1a   :  { %p606_p10 = scmp.ne.s32.totalorder %s46_s11, %s605_s15  ;;  %p611_p12 = scmp.lt.s32.totalorder %s605_s15, %s605_s15 }
  0x1c   :  { %p612_p13 = por %p611_p12, %p610_p11 }
  0x1e   :  { %p613_p0 = pnand %p612_p13, %p606_p10 }
  0x20   :  { %616 = shalt.err (!%p613_p0)
}
  0x21   :  { %51 = dma.hbm_to_vmem [thread:$0]  %s717_s3, 4096, %s46_s11, [#allocation7], %s644_s27, %s644_s27, %s645_s28  }
  0x22   :  { %637 = dma.done.wait [#allocation4], 128  }
  0x23   :  { %638 = vsyncadd [#allocation4], 4294967168 }
  0x24   :  { %639 = dma.done.wait [#allocation7], 4608  }
  0x25   :  { %640 = vsyncadd [#allocation7], 4294962688  ;;  %v648_v0 = vmov 0   ;;  %v499_v1 = vld [vmem:[#allocation6 + $0x14] ss:$8 sps:$4 sm:$0xff]   ;;  %vm106_vm0 = vcmask 261120   ;;  %v76_v39 = vlaneseq }
  0x26   :  { %142 = vmatprep.mubr.bf16.mxu0 %v648_v0  ;;  %v501_v2 = vld [vmem:[#allocation6 + $0x10] ss:$8 sps:$4 sm:$0xff]   ;;  %122 = vmatprep.subr.bf16.mxu0 %v499_v1  ;;  %v502_v3 = vld [vmem:[#allocation6 + $0x4] ss:$8 sps:$4 sm:$0xff]   ;;  %v504_v4 = vld [vmem:[#allocation6] ss:$8 sps:$4 sm:$0xff]  }
  0x27   :  { %v68_v5 = vld [vmem:[#allocation3] sm:$0xff]  ;;  %123 = vmatpush1.bf16.msra.mxu0 %v501_v2  ;;  %v508_v8 = vld [vmem:[#allocation8 + $0x64] ss:$8 sps:$4 sm:$0xff]   ;;  %v510_v10 = vld [vmem:[#allocation8 + $0x60] ss:$8 sps:$4 sm:$0xff]   ;;  %v77_v40 = vshrl.u32 %v76_v39, 7 }
  0x28   :  { %v505_v6 = vld [vmem:[#allocation8 + $0x74] ss:$8 sps:$4 sm:$0xff]   ;;  %124 = vmatprep.subr.bf16.mxu0 %v502_v3  ;;  %v507_v7 = vld [vmem:[#allocation8 + $0x70] ss:$8 sps:$4 sm:$0xff]   ;;  %v69_v9 = vpack.c.bf16 %v68_v5, %v68_v5  ;;  %v514_v13 = vld [vmem:[#allocation8 + $0x44] ss:$8 sps:$4 sm:$0xff]  }
  0x29   :  { %359 = vmatprep.subr.bf16.mxu1 %v505_v6  ;;  %v511_v11 = vld [vmem:[#allocation8 + $0x54] ss:$8 sps:$4 sm:$0xff]   ;;  %v513_v12 = vld [vmem:[#allocation8 + $0x50] ss:$8 sps:$4 sm:$0xff]   ;;  %v516_v14 = vld [vmem:[#allocation8 + $0x40] ss:$8 sps:$4 sm:$0xff]  }
  0x2a   :  { %360 = vmatpush1.bf16.msra.mxu1 %v507_v7  ;;  %v517_v15 = vld [vmem:[#allocation8 + $0x34] ss:$8 sps:$4 sm:$0xff]   ;;  %v519_v16 = vld [vmem:[#allocation8 + $0x30] ss:$8 sps:$4 sm:$0xff]   ;;  %v520_v17 = vld [vmem:[#allocation8 + $0x24] ss:$8 sps:$4 sm:$0xff]  }
  0x2b   :  { %125 = vmatpush1.bf16.msra.mxu0 %v504_v4  ;;  %361 = vmatprep.subr.bf16.mxu1 %v508_v8  ;;  %v522_v18 = vld [vmem:[#allocation8 + $0x20] ss:$8 sps:$4 sm:$0xff]   ;;  %v523_v19 = vld [vmem:[#allocation8 + $0x14] ss:$8 sps:$4 sm:$0xff]   ;;  %v525_v20 = vld [vmem:[#allocation8 + $0x10] ss:$8 sps:$4 sm:$0xff]  }
  0x2c   :  { %v526_v21 = vld [vmem:[#allocation8 + $0x4] ss:$8 sps:$4 sm:$0xff]   ;;  %v528_v22 = vld [vmem:[#allocation8] ss:$8 sps:$4 sm:$0xff]   ;;  %v529_v23 = vld [vmem:[#allocation8 + $0xf4] ss:$8 sps:$4 sm:$0xff]  }
  0x2d   :  { %v531_v24 = vld [vmem:[#allocation8 + $0xf0] ss:$8 sps:$4 sm:$0xff]   ;;  %v532_v25 = vld [vmem:[#allocation8 + $0xe4] ss:$8 sps:$4 sm:$0xff]   ;;  %v534_v26 = vld [vmem:[#allocation8 + $0xe0] ss:$8 sps:$4 sm:$0xff]  }
  0x2e   :  { %458 = vmatmul.mubr.msk.bf16.vlgmr.msra.gmra.mxu0 %vm106_vm0, %v69_v9  ;;  %362 = vmatpush1.bf16.msra.mxu1 %v510_v10  ;;  %v535_v27 = vld [vmem:[#allocation8 + $0xd4] ss:$8 sps:$4 sm:$0xff]   ;;  %v537_v28 = vld [vmem:[#allocation8 + $0xd0] ss:$8 sps:$4 sm:$0xff]   ;;  %v538_v29 = vld [vmem:[#allocation8 + $0xc4] ss:$8 sps:$4 sm:$0xff]   ;;  %v420_v9 = vstv %s720_s6 }
  0x2f   :  { %363 = vmatprep.subr.bf16.mxu1 %v511_v11  ;;  %v540_v30 = vld [vmem:[#allocation8 + $0xc0] ss:$8 sps:$4 sm:$0xff]   ;;  %v541_v31 = vld [vmem:[#allocation8 + $0xb4] ss:$8 sps:$4 sm:$0xff]   ;;  %v543_v32 = vld [vmem:[#allocation8 + $0xb0] ss:$8 sps:$4 sm:$0xff]  }
  0x30   :  { %v544_v33 = vld [vmem:[#allocation8 + $0xa4] ss:$8 sps:$4 sm:$0xff]   ;;  %v546_v34 = vld [vmem:[#allocation8 + $0xa0] ss:$8 sps:$4 sm:$0xff]   ;;  %v547_v35 = vld [vmem:[#allocation8 + $0x94] ss:$8 sps:$4 sm:$0xff]  }
  0x31   :  { %v549_v36 = vld [vmem:[#allocation8 + $0x90] ss:$8 sps:$4 sm:$0xff]   ;;  %v550_v37 = vld [vmem:[#allocation8 + $0x84] ss:$8 sps:$4 sm:$0xff]   ;;  %v552_v38 = vld [vmem:[#allocation8 + $0x80] ss:$8 sps:$4 sm:$0xff]  }
  0x32   :  { %364 = vmatpush1.bf16.msra.mxu1 %v513_v12  ;;  %v78_v41 = vsub.s32 0, %v77_v40  ;;  %v74_v42 = vld [vmem:[%s716_s2] sm:$0x3]  ;;  %v82_v43 = vsub.s32 1, %v77_v40  ;;  %vm436_vm1 = vcmask 57344  }
  0x33   :  { %365 = vmatprep.subr.bf16.mxu1 %v514_v13  ;;  %v187_v56 = vld [vmem:[%s718_s4] sm:$0x3] }
  0x34   :  { %v79_v44 = vrot.slane %v74_v42, %v78_v41  ;;  %v83_v45 = vrot.slane %v74_v42, %v82_v43  ;;  %v192_v57 = vrot.slane %v187_v56, %v78_v41  ;;  %v196_v58 = vrot.slane %v187_v56, %v82_v43  ;;  %v402_v60 = vld [vmem:[%s719_s5] sm:$0x3]  ;;  %s649_s5 = smov [#allocation9]  }
  0x35   :  { %v407_v1 = vrot.slane %v402_v60, %v78_v41  ;;  %v411_v2 = vrot.slane %v402_v60, %v82_v43  ;;  %s444_s21 = sshll.u32 %s649_s5, 4  ;;  %s445_s21 = int_to_ptr.vmem [resolvable:$true] %s444_s21 }
  0x36   :  { %366 = vmatpush1.bf16.msra.mxu1 %v516_v14  ;;  %s617_s22 = scalar_lea.vmem %s445_s21, 16  ;;  %s621_s23 = scalar_lea.vmem %s445_s21, 32 }
  0x37   :  { %367 = vmatprep.subr.bf16.mxu1 %v517_v15  ;;  %v430_v15 = vand.u32 127, %v76_v39  ;;  %p618_p1 = scmp.ne.s32.totalorder %s445_s21, %s617_s22  ;;  %p622_p2 = scmp.lt.s32.totalorder %s445_s21, %s445_s21 }
  0x38   :  { %p623_p3 = scmp.lt.s32.totalorder %s621_s23, %s617_s22 }
  0x3a   :  { %368 = vmatpush1.bf16.msra.mxu1 %v519_v16  ;;  %v433_v16 = vsub.s32 %v430_v15, %v77_v40  ;;  %p624_p4 = por %p623_p3, %p622_p2 }
  0x3b   :  { %369 = vmatprep.subr.bf16.mxu1 %v520_v17 }
  0x3c   :  { %p625_p5 = pnand %p624_p4, %p618_p1 }
  0x3e   :  { %370 = vmatpush1.bf16.msra.mxu1 %v522_v18 }
  0x3f   :  { %371 = vmatprep.subr.bf16.mxu1 %v523_v19 }
  0x42   :  { %372 = vmatpush1.bf16.msra.mxu1 %v525_v20 }
  0x43   :  { %373 = vmatprep.subr.bf16.mxu1 %v526_v21 }
  0x46   :  { %374 = vmatpush1.bf16.msra.mxu1 %v528_v22 }
  0x47   :  { %375 = vmatprep.subr.bf16.mxu1 %v529_v23 }
  0x4a   :  { %376 = vmatpush2.bf16.msra.mxu1 %v531_v24 }
  0x4b   :  { %377 = vmatprep.subr.bf16.mxu1 %v532_v25 }
  0x4e   :  { %378 = vmatpush2.bf16.msra.mxu1 %v534_v26 }
  0x4f   :  { %379 = vmatprep.subr.bf16.mxu1 %v535_v27 }
  0x52   :  { %380 = vmatpush2.bf16.msra.mxu1 %v537_v28 }
  0x53   :  { %381 = vmatprep.subr.bf16.mxu1 %v538_v29 }
  0x56   :  { %382 = vmatpush2.bf16.msra.mxu1 %v540_v30 }
  0x57   :  { %383 = vmatprep.subr.bf16.mxu1 %v541_v31 }
  0x5a   :  { %384 = vmatpush2.bf16.msra.mxu1 %v543_v32 }
  0x5b   :  { %385 = vmatprep.subr.bf16.mxu1 %v544_v33 }
  0x5e   :  { %386 = vmatpush2.bf16.msra.mxu1 %v546_v34 }
  0x5f   :  { %387 = vmatprep.subr.bf16.mxu1 %v547_v35 }
  0x62   :  { %388 = vmatpush2.bf16.msra.mxu1 %v549_v36 }
  0x63   :  { %389 = vmatprep.subr.bf16.mxu1 %v550_v37 }
  0x66   :  { %390 = vmatpush2.bf16.msra.mxu1 %v552_v38 }
  0xee   :  { %v144_v46 = vpop.f32.mrf.mxu0 }
  0xef   :  { %v145_v47 = vadd.f32 %v144_v46, %v79_v44 }
  0xf0   :  { %v146_v48 = vpop.f32.mrf.mxu0 }
  0xf1   :  { %v147_v49 = vadd.f32 %v146_v48, %v83_v45  ;;  %v151_v50 = vmax.f32 %v145_v47, 0.0 }
  0xf2   :  { %v148_v51 = vpop.f32.mrf.mxu0 }
  0xf3   :  { %v152_v52 = vmax.f32 %v147_v49, 0.0  ;;  %v153_v55 = vpack.c.bf16 %v151_v50, %v151_v50 }
  0xf4   :  { %v149_v53 = vpop.f32.mrf.mxu0 }
  0xf5   :  { %v154_v54 = vpack.c.bf16 %v152_v52, %v152_v52 }
  0xf7   :  { %391 = vmatprep.mubr.bf16.mxu1 %v154_v54 }
  0xf8   :  { %392 = vmatmul.mubr.bf16.vlgmr.msra.gmra.mxu1 %v153_v55 }
 0x1b8   :  { %v393_v59 = vpop.f32.mrf.mxu1 }
 0x1b9   :  { %v394_v61 = vadd.f32 %v393_v59, %v192_v57 }
 0x1ba   :  { %v395_v62 = vpop.f32.mrf.mxu1 }
 0x1bb   :  { %v400_v63 = vmax.f32 %v394_v61, 0.0  ;;  %v396_v0 = vadd.f32 %v395_v62, %v196_v58 }
 0x1bc   :  { %v397_v3 = vpop.f32.mrf.mxu1 }
 0x1bd   :  { %v401_v4 = vmax.f32 %v396_v0, 0.0  ;;  %v414_v6 = vmul.f32 %v407_v1, %v400_v63 }
 0x1be   :  { %v398_v5 = vpop.f32.mrf.mxu1 }
 0x1bf   :  { %v415_v7 = vmul.f32 %v411_v2, %v401_v4 }
 0x1c1   :  { %v416_v8 = vadd.f32 %v415_v7, %v414_v6 }
 0x1c3   :  { %417 = vadd.xlane.f32.xlu0 %v416_v8 }
 0x24c   :  { %v418_v10 = vpop.xlane.xlu0 %417 }
 0x24d   :  { %v421_v11 = vadd.f32 %v420_v9, %v418_v10 }
 0x24f   :  { %v491_v12 = vmul.f32 -1.442695, %v421_v11 }
 0x251   :  { %553 = vpow2.f32 %v491_v12 }
 0x25e   :  { %v554_v13 = vpop.eup %553 }
 0x25f   :  { %v425_v14 = vadd.f32 1.0, %v554_v13 }
 0x261   :  { %555 = vrcp.f32 %v425_v14 }
 0x26e   :  { %v556_v17 = vpop.eup %555 }
 0x26f   :  { %v434_v18 = vrot.slane %v556_v17, %v433_v16 }
 0x271   :  { %437 = vst.msk [vmem:[#allocation9] sm:$0x1] %vm436_vm1, %v434_v18 }
 0x272   :  { %628 = shalt.err (!%p625_p5)
}
 0x273   :  { %447 = dma.vmem_to_hbm [thread:$0]  %s445_s21, 16, %s721_s7, [#allocation5]  }
 0x274   :  { %641 = dma.done.wait [#allocation5], 16  }
 0x275   :  { %642 = vsyncadd [#allocation5], 4294967280 }
 0x276   :  { %451 = vsyncpa [#allocation4], 1 }
 0x277   :  { %452 = vsyncpa [#allocation7], 1 }
 0x278   :  { %453 = vsyncpa [#allocation5], 1 }

// kernel: tpu_custom_call.1
= control target key start
LH: loop header
LB: loop body
LE: loop exit
PB: predicated region body
PF: predicated region fallthrough
CT: control target
= control target key end

     0   :  { %13 = vsyncpa [#allocation4], 0  ;;  %s714_s0 = inlined_call_operand.hbm [shape: f32[8,32], index: 0, kind: input, shape index: {}]   ;;  %s715_s1 = inlined_call_operand.hbm [shape: bf16[32,256], index: 1, kind: input, shape index: {}]   ;;  %s716_s2 = inlined_call_operand.vmem [shape: f32[1,256], index: 2, kind: input, shape index: {}]   ;;  %s717_s3 = inlined_call_operand.hbm [shape: bf16[256,256], index: 3, kind: input, shape index: {}]   ;;  %s718_s4 = inlined_call_operand.vmem [shape: f32[1,256], index: 4, kind: input, shape index: {}]   ;;  %s719_s5 = inlined_call_operand.vmem [shape: f32[1,256], index: 5, kind: input, shape index: {}]   ;;  %s720_s6 = inlined_call_operand.<no memory space> [shape: f32[1], index: 6, kind: input, shape index: {}]   ;;  %s721_s7 = inlined_call_operand.hbm [shape: f32[1,8], index: 7, kind: output, shape index: {}]  }
   0x1   :  { %14 = vsyncpa [#allocation7], 0 }
   0x2   :  { %15 = vsyncpa [#allocation5], 0  ;;  %s643_s24 = smov [#allocation6]  }
   0x3   :  { %s31_s25 = sshll.u32 %s643_s24, 4  ;;  %s32_s25 = int_to_ptr.vmem [resolvable:$true] %s31_s25 }
   0x4   :  { %s565_s26 = scalar_lea.vmem %s32_s25, 512  ;;  %p570_p1 = scmp.lt.s32.totalorder %s32_s25, %s32_s25 }
   0x5   :  { %p566_p0 = scmp.ne.s32.totalorder %s32_s25, %s565_s26  ;;  %p571_p2 = scmp.lt.s32.totalorder %s565_s26, %s565_s26 }
   0x7   :  { %p572_p3 = por %p571_p2, %p570_p1 }
   0x9   :  { %p573_p4 = pnand %p572_p3, %p566_p0 }
   0xb   :  { %576 = shalt.err (!%p573_p4)
}
   0xc   :  { %s644_s27 = smov 128   ;;  %s645_s28 = smov 8  }
   0xd   :  { %37 = dma.hbm_to_vmem [thread:$0]  %s715_s1, 512, %s32_s25, [#allocation7], %s644_s27, %s644_s27, %s645_s28  }
   0xe   :  { %s646_s8 = smov [#allocation3]   ;;  %s647_s10 = smov [#allocation8]  }
   0xf   :  { %s22_s9 = sshll.u32 %s646_s8, 4  ;;  %s45_s11 = sshll.u32 %s647_s10, 4  ;;  %s23_s9 = int_to_ptr.vmem [resolvable:$true] %s22_s9  ;;  %s46_s11 = int_to_ptr.vmem [resolvable:$true] %s45_s11 }
  0x10   :  { %s585_s12 = scalar_lea.vmem %s23_s9, 128  ;;  %p590_p6 = scmp.lt.s32.totalorder %s23_s9, %s23_s9 }
  0x11   :  { %p586_p5 = scmp.ne.s32.totalorder %s23_s9, %s585_s12  ;;  %p591_p7 = scmp.lt.s32.totalorder %s585_s12, %s585_s12 }
  0x13   :  { %p592_p8 = por %p591_p7, %p590_p6 }
  0x15   :  { %p593_p9 = pnand %p592_p8, %p586_p5 }
  0x17   :  { %596 = shalt.err (!%p593_p9)
}
  0x18   :  { %25 = dma.hbm_to_vmem [thread:$0]  %s714_s0, 128, %s23_s9, [#allocation4]  }
  0x19   :  { %s605_s15 = scalar_lea.vmem %s46_s11, 4096  ;;  %p610_p11 = scmp.lt.s32.totalorder %s46_s11, %s46_s11 }
  0x1a   :  { %p606_p10 = scmp.ne.s32.totalorder %s46_s11, %s605_s15  ;;  %p611_p12 = scmp.lt.s32.totalorder %s605_s15, %s605_s15 }
  0x1c   :  { %p612_p13 = por %p611_p12, %p610_p11 }
  0x1e   :  { %p613_p0 = pnand %p612_p13, %p606_p10 }
  0x20   :  { %616 = shalt.err (!%p613_p0)
}
  0x21   :  { %51 = dma.hbm_to_vmem [thread:$0]  %s717_s3, 4096, %s46_s11, [#allocation7], %s644_s27, %s644_s27, %s645_s28  }
  0x22   :  { %637 = dma.done.wait [#allocation4], 128  }
  0x23   :  { %638 = vsyncadd [#allocation4], 4294967168 }
  0x24   :  { %639 = dma.done.wait [#allocation7], 4608  }
  0x25   :  { %640 = vsyncadd [#allocation7], 4294962688  ;;  %v648_v0 = vmov 0   ;;  %v499_v1 = vld [vmem:[#allocation6 + $0x14] ss:$8 sps:$4 sm:$0xff]   ;;  %vm106_vm0 = vcmask 261120   ;;  %v76_v39 = vlaneseq }
  0x26   :  { %142 = vmatprep.mubr.bf16.mxu0 %v648_v0  ;;  %v501_v2 = vld [vmem:[#allocation6 + $0x10] ss:$8 sps:$4 sm:$0xff]   ;;  %122 = vmatprep.subr.bf16.mxu0 %v499_v1  ;;  %v502_v3 = vld [vmem:[#allocation6 + $0x4] ss:$8 sps:$4 sm:$0xff]   ;;  %v504_v4 = vld [vmem:[#allocation6] ss:$8 sps:$4 sm:$0xff]  }
  0x27   :  { %v68_v5 = vld [vmem:[#allocation3] sm:$0xff]  ;;  %123 = vmatpush1.bf16.msra.mxu0 %v501_v2  ;;  %v508_v8 = vld [vmem:[#allocation8 + $0x64] ss:$8 sps:$4 sm:$0xff]   ;;  %v510_v10 = vld [vmem:[#allocation8 + $0x60] ss:$8 sps:$4 sm:$0xff]   ;;  %v77_v40 = vshrl.u32 %v76_v39, 7 }
  0x28   :  { %v505_v6 = vld [vmem:[#allocation8 + $0x74] ss:$8 sps:$4 sm:$0xff]   ;;  %124 = vmatprep.subr.bf16.mxu0 %v502_v3  ;;  %v507_v7 = vld [vmem:[#allocation8 + $0x70] ss:$8 sps:$4 sm:$0xff]   ;;  %v69_v9 = vpack.c.bf16 %v68_v5, %v68_v5  ;;  %v514_v13 = vld [vmem:[#allocation8 + $0x44] ss:$8 sps:$4 sm:$0xff]  }
  0x29   :  { %359 = vmatprep.subr.bf16.mxu1 %v505_v6  ;;  %v511_v11 = vld [vmem:[#allocation8 + $0x54] ss:$8 sps:$4 sm:$0xff]   ;;  %v513_v12 = vld [vmem:[#allocation8 + $0x50] ss:$8 sps:$4 sm:$0xff]   ;;  %v516_v14 = vld [vmem:[#allocation8 + $0x40] ss:$8 sps:$4 sm:$0xff]  }
  0x2a   :  { %360 = vmatpush1.bf16.msra.mxu1 %v507_v7  ;;  %v517_v15 = vld [vmem:[#allocation8 + $0x34] ss:$8 sps:$4 sm:$0xff]   ;;  %v519_v16 = vld [vmem:[#allocation8 + $0x30] ss:$8 sps:$4 sm:$0xff]   ;;  %v520_v17 = vld [vmem:[#allocation8 + $0x24] ss:$8 sps:$4 sm:$0xff]  }
  0x2b   :  { %125 = vmatpush1.bf16.msra.mxu0 %v504_v4  ;;  %361 = vmatprep.subr.bf16.mxu1 %v508_v8  ;;  %v522_v18 = vld [vmem:[#allocation8 + $0x20] ss:$8 sps:$4 sm:$0xff]   ;;  %v523_v19 = vld [vmem:[#allocation8 + $0x14] ss:$8 sps:$4 sm:$0xff]   ;;  %v525_v20 = vld [vmem:[#allocation8 + $0x10] ss:$8 sps:$4 sm:$0xff]  }
  0x2c   :  { %v526_v21 = vld [vmem:[#allocation8 + $0x4] ss:$8 sps:$4 sm:$0xff]   ;;  %v528_v22 = vld [vmem:[#allocation8] ss:$8 sps:$4 sm:$0xff]   ;;  %v529_v23 = vld [vmem:[#allocation8 + $0xf4] ss:$8 sps:$4 sm:$0xff]  }
  0x2d   :  { %v531_v24 = vld [vmem:[#allocation8 + $0xf0] ss:$8 sps:$4 sm:$0xff]   ;;  %v532_v25 = vld [vmem:[#allocation8 + $0xe4] ss:$8 sps:$4 sm:$0xff]   ;;  %v534_v26 = vld [vmem:[#allocation8 + $0xe0] ss:$8 sps:$4 sm:$0xff]  }
  0x2e   :  { %458 = vmatmul.mubr.msk.bf16.vlgmr.msra.gmra.mxu0 %vm106_vm0, %v69_v9  ;;  %362 = vmatpush1.bf16.msra.mxu1 %v510_v10  ;;  %v535_v27 = vld [vmem:[#allocation8 + $0xd4] ss:$8 sps:$4 sm:$0xff]   ;;  %v537_v28 = vld [vmem:[#allocation8 + $0xd0] ss:$8 sps:$4 sm:$0xff]   ;;  %v538_v29 = vld [vmem:[#allocation8 + $0xc4] ss:$8 sps:$4 sm:$0xff]   ;;  %v420_v9 = vstv %s720_s6 }
  0x2f   :  { %363 = vmatprep.subr.bf16.mxu1 %v511_v11  ;;  %v540_v30 = vld [vmem:[#allocation8 + $0xc0] ss:$8 sps:$4 sm:$0xff]   ;;  %v541_v31 = vld [vmem:[#allocation8 + $0xb4] ss:$8 sps:$4 sm:$0xff]   ;;  %v543_v32 = vld [vmem:[#allocation8 + $0xb0] ss:$8 sps:$4 sm:$0xff]  }
  0x30   :  { %v544_v33 = vld [vmem:[#allocation8 + $0xa4] ss:$8 sps:$4 sm:$0xff]   ;;  %v546_v34 = vld [vmem:[#allocation8 + $0xa0] ss:$8 sps:$4 sm:$0xff]   ;;  %v547_v35 = vld [vmem:[#allocation8 + $0x94] ss:$8 sps:$4 sm:$0xff]  }
  0x31   :  { %v549_v36 = vld [vmem:[#allocation8 + $0x90] ss:$8 sps:$4 sm:$0xff]   ;;  %v550_v37 = vld [vmem:[#allocation8 + $0x84] ss:$8 sps:$4 sm:$0xff]   ;;  %v552_v38 = vld [vmem:[#allocation8 + $0x80] ss:$8 sps:$4 sm:$0xff]  }
  0x32   :  { %364 = vmatpush1.bf16.msra.mxu1 %v513_v12  ;;  %v78_v41 = vsub.s32 0, %v77_v40  ;;  %v74_v42 = vld [vmem:[%s716_s2] sm:$0x3]  ;;  %v82_v43 = vsub.s32 1, %v77_v40  ;;  %vm436_vm1 = vcmask 57344  }
  0x33   :  { %365 = vmatprep.subr.bf16.mxu1 %v514_v13  ;;  %v187_v56 = vld [vmem:[%s718_s4] sm:$0x3] }
  0x34   :  { %v79_v44 = vrot.slane %v74_v42, %v78_v41  ;;  %v83_v45 = vrot.slane %v74_v42, %v82_v43  ;;  %v192_v57 = vrot.slane %v187_v56, %v78_v41  ;;  %v196_v58 = vrot.slane %v187_v56, %v82_v43  ;;  %v402_v60 = vld [vmem:[%s719_s5] sm:$0x3]  ;;  %s649_s5 = smov [#allocation9]  }
  0x35   :  { %v407_v1 = vrot.slane %v402_v60, %v78_v41  ;;  %v411_v2 = vrot.slane %v402_v60, %v82_v43  ;;  %s444_s21 = sshll.u32 %s649_s5, 4  ;;  %s445_s21 = int_to_ptr.vmem [resolvable:$true] %s444_s21 }
  0x36   :  { %366 = vmatpush1.bf16.msra.mxu1 %v516_v14  ;;  %s617_s22 = scalar_lea.vmem %s445_s21, 16  ;;  %s621_s23 = scalar_lea.vmem %s445_s21, 32 }
  0x37   :  { %367 = vmatprep.subr.bf16.mxu1 %v517_v15  ;;  %v430_v15 = vand.u32 127, %v76_v39  ;;  %p618_p1 = scmp.ne.s32.totalorder %s445_s21, %s617_s22  ;;  %p622_p2 = scmp.lt.s32.totalorder %s445_s21, %s445_s21 }
  0x38   :  { %p623_p3 = scmp.lt.s32.totalorder %s621_s23, %s617_s22 }
  0x3a   :  { %368 = vmatpush1.bf16.msra.mxu1 %v519_v16  ;;  %v433_v16 = vsub.s32 %v430_v15, %v77_v40  ;;  %p624_p4 = por %p623_p3, %p622_p2 }
  0x3b   :  { %369 = vmatprep.subr.bf16.mxu1 %v520_v17 }
  0x3c   :  { %p625_p5 = pnand %p624_p4, %p618_p1 }
  0x3e   :  { %370 = vmatpush1.bf16.msra.mxu1 %v522_v18 }
  0x3f   :  { %371 = vmatprep.subr.bf16.mxu1 %v523_v19 }
  0x42   :  { %372 = vmatpush1.bf16.msra.mxu1 %v525_v20 }
  0x43   :  { %373 = vmatprep.subr.bf16.mxu1 %v526_v21 }
  0x46   :  { %374 = vmatpush1.bf16.msra.mxu1 %v528_v22 }
  0x47   :  { %375 = vmatprep.subr.bf16.mxu1 %v529_v23 }
  0x4a   :  { %376 = vmatpush2.bf16.msra.mxu1 %v531_v24 }
  0x4b   :  { %377 = vmatprep.subr.bf16.mxu1 %v532_v25 }
  0x4e   :  { %378 = vmatpush2.bf16.msra.mxu1 %v534_v26 }
  0x4f   :  { %379 = vmatprep.subr.bf16.mxu1 %v535_v27 }
  0x52   :  { %380 = vmatpush2.bf16.msra.mxu1 %v537_v28 }
  0x53   :  { %381 = vmatprep.subr.bf16.mxu1 %v538_v29 }
  0x56   :  { %382 = vmatpush2.bf16.msra.mxu1 %v540_v30 }
  0x57   :  { %383 = vmatprep.subr.bf16.mxu1 %v541_v31 }
  0x5a   :  { %384 = vmatpush2.bf16.msra.mxu1 %v543_v32 }
  0x5b   :  { %385 = vmatprep.subr.bf16.mxu1 %v544_v33 }
  0x5e   :  { %386 = vmatpush2.bf16.msra.mxu1 %v546_v34 }
  0x5f   :  { %387 = vmatprep.subr.bf16.mxu1 %v547_v35 }
  0x62   :  { %388 = vmatpush2.bf16.msra.mxu1 %v549_v36 }
  0x63   :  { %389 = vmatprep.subr.bf16.mxu1 %v550_v37 }
  0x66   :  { %390 = vmatpush2.bf16.msra.mxu1 %v552_v38 }
  0xee   :  { %v144_v46 = vpop.f32.mrf.mxu0 }
  0xef   :  { %v145_v47 = vadd.f32 %v144_v46, %v79_v44 }
  0xf0   :  { %v146_v48 = vpop.f32.mrf.mxu0 }
  0xf1   :  { %v147_v49 = vadd.f32 %v146_v48, %v83_v45  ;;  %v151_v50 = vmax.f32 %v145_v47, 0.0 }
  0xf2   :  { %v148_v51 = vpop.f32.mrf.mxu0 }
  0xf3   :  { %v152_v52 = vmax.f32 %v147_v49, 0.0  ;;  %v153_v55 = vpack.c.bf16 %v151_v50, %v151_v50 }
  0xf4   :  { %v149_v53 = vpop.f32.mrf.mxu0 }
  0xf5   :  { %v154_v54 = vpack.c.bf16 %v152_v52, %v152_v52 }
  0xf7   :  { %391 = vmatprep.mubr.bf16.mxu1 %v154_v54 }
  0xf8   :  { %392 = vmatmul.mubr.bf16.vlgmr.msra.gmra.mxu1 %v153_v55 }
 0x1b8   :  { %v393_v59 = vpop.f32.mrf.mxu1 }
 0x1b9   :  { %v394_v61 = vadd.f32 %v393_v59, %v192_v57 }
 0x1ba   :  { %v395_v62 = vpop.f32.mrf.mxu1 }
 0x1bb   :  { %v400_v63 = vmax.f32 %v394_v61, 0.0  ;;  %v396_v0 = vadd.f32 %v395_v62, %v196_v58 }
 0x1bc   :  { %v397_v3 = vpop.f32.mrf.mxu1 }
 0x1bd   :  { %v401_v4 = vmax.f32 %v396_v0, 0.0  ;;  %v414_v6 = vmul.f32 %v407_v1, %v400_v63 }
 0x1be   :  { %v398_v5 = vpop.f32.mrf.mxu1 }
 0x1bf   :  { %v415_v7 = vmul.f32 %v411_v2, %v401_v4 }
 0x1c1   :  { %v416_v8 = vadd.f32 %v415_v7, %v414_v6 }
 0x1c3   :  { %417 = vadd.xlane.f32.xlu0 %v416_v8 }
 0x24c   :  { %v418_v10 = vpop.xlane.xlu0 %417 }
 0x24d   :  { %v421_v11 = vadd.f32 %v420_v9, %v418_v10 }
 0x24f   :  { %v491_v12 = vmul.f32 -1.442695, %v421_v11 }
 0x251   :  { %553 = vpow2.f32 %v491_v12 }
 0x25e   :  { %v554_v13 = vpop.eup %553 }
 0x25f   :  { %v425_v14 = vadd.f32 1.0, %v554_v13 }
 0x261   :  { %555 = vrcp.f32 %v425_v14 }
 0x26e   :  { %v556_v17 = vpop.eup %555 }
 0x26f   :  { %v434_v18 = vrot.slane %v556_v17, %v433_v16 }
 0x271   :  { %437 = vst.msk [vmem:[#allocation9] sm:$0x1] %vm436_vm1, %v434_v18 }
 0x272   :  { %628 = shalt.err (!%p625_p5)
}
 0x273   :  { %447 = dma.vmem_to_hbm [thread:$0]  %s445_s21, 16, %s721_s7, [#allocation5]  }
 0x274   :  { %641 = dma.done.wait [#allocation5], 16  }
 0x275   :  { %642 = vsyncadd [#allocation5], 4294967280 }
 0x276   :  { %451 = vsyncpa [#allocation4], 1 }
 0x277   :  { %452 = vsyncpa [#allocation7], 1 }
 0x278   :  { %453 = vsyncpa [#allocation5], 1 }

</bundles_post_ra>
